<compile_context>
chip_gen: v6e
topology: v6e:2x2x1
jax: 0.10.0
libtpu: 0.0.40
codegen_flags: <defaults>
</compile_context>

<pallas_src>
import functools

import jax
import jax.numpy as jnp
from jax.experimental import pallas as pl
from jax.experimental.pallas import tpu as pltpu


def _round_up(n, m):
    return (n + m - 1) // m * m


def rnn_kernel(x_ref, h0_ref, w_ih_ref, w_hh_ref, b_ref,
               w_lin_ref, b_lin_ref, out_ref, state_ref):
    """Fused RNN recurrence + Linear + Softmax.

    x_ref     : (B, T, I)   batch-first input, exactly as the caller holds it
    h0_ref    : (1, B, H)   initial hidden state (unpadded)
    w_ih_ref  : (I, Hp)     W_ih^T, padded output lanes are zero
    w_hh_ref  : (Hp, Hp)    W_hh^T, padded rows/cols are zero
    b_ref     : (1, Hp)     b_ih + b_hh, padded lanes zero
    w_lin_ref : (Hp, Op)    W_lin^T, padded rows/cols zero
    b_lin_ref : (1, Op)     linear bias, padded lanes -1e30 (softmax mask)
    out_ref   : (B, Op)     softmax output
    state_ref : (B, Hp)     final hidden state (padded lanes stay exactly 0)
    """
    B, T, I = x_ref.shape
    H = h0_ref.shape[-1]
    Hp = w_hh_ref.shape[0]
    f32 = jnp.float32

    # ---- Phase 1: hoisted input projection for ALL timesteps (one MXU matmul).
    # Kept as a traced value (vregs) - no VMEM scratch round trip.
    x_all = x_ref[...].reshape(B * T, I)                      # layout-free merge
    xp = jnp.dot(x_all, w_ih_ref[...], preferred_element_type=f32) + b_ref[...]
    xp = xp.reshape(B, T, Hp)
    # TODO(synk): for large T (T*B*Hp beyond a few dozen vregs) spill xp to a
    # VMEM scratch and chunk T into an 'arbitrary' grid axis carrying h.

    # ---- Phase 2: serial recurrence.  W_hh^T loaded once and reused by the
    # statically unrolled loop; each step only streams the B-row LHS + tanh.
    w_hh = w_hh_ref[...]
    # First step consumes the *unpadded* incoming state against the first H
    # rows of W_hh^T, so the wrapper never pads the state per call.  Because
    # the padded W columns / bias lanes are zero, h's padded lanes are exactly
    # 0 from step 0 onward.
    h = jnp.tanh(xp[:, 0, :] +
                 jnp.dot(h0_ref[0], w_hh[:H, :], preferred_element_type=f32))
    for t in range(1, T):
        h = jnp.tanh(xp[:, t, :] +
                     jnp.dot(h, w_hh, preferred_element_type=f32))
    # TODO(synk): drive the MXU explicitly (pltpu.matmul_push_rhs /
    # matmul_acc_lhs / matmul_pop) to keep W_hh weights-stationary across all
    # steps, and on v7x accumulate xp[t] in place in the MRB.

    # ---- Phase 3: fused Linear + Softmax epilogue on the last hidden state.
    state_ref[...] = h
    logits = jnp.dot(h, w_lin_ref[...], preferred_element_type=f32) + b_lin_ref[...]
    m = jnp.max(logits, axis=-1, keepdims=True)
    e = jnp.exp(logits - m)                 # padded lanes: exp(-1e30 - m) == 0
    s = jnp.sum(e, axis=-1, keepdims=True)
    r = pl.reciprocal(s, approx=True)       # EUP slot
    r = r * (2.0 - s * r)                   # one Newton step -> full f32 accuracy
    out_ref[...] = e * r


def pad_rnn_params(w_ih, w_hh, b_ih, b_hh, w_lin, b_lin):
    """One-time (init-time) padding + transposition of the weights so the
    per-call forward pass issues zero pad/transpose XLA ops."""
    H, I = w_ih.shape
    O = w_lin.shape[0]
    Hp = _round_up(H, 128)
    Op = _round_up(O, 128)
    f32 = jnp.float32
    w_ih_p = jnp.zeros((I, Hp), f32).at[:, :H].set(w_ih.T.astype(f32))
    w_hh_p = jnp.zeros((Hp, Hp), f32).at[:H, :H].set(w_hh.T.astype(f32))
    b_p = jnp.zeros((1, Hp), f32).at[:, :H].set((b_ih + b_hh).astype(f32))
    w_lin_p = jnp.zeros((Hp, Op), f32).at[:H, :O].set(w_lin.T.astype(f32))
    # Padded logit lanes get a huge negative (finite!) bias so softmax ignores
    # them: a real lane always wins the row max and exp underflows to 0.
    b_lin_p = jnp.full((1, Op), -1e30, f32).at[:, :O].set(b_lin.astype(f32))
    return w_ih_p, w_hh_p, b_p, w_lin_p, b_lin_p


@functools.partial(jax.jit, static_argnums=(7,))
def rnn_forward(x, state, w_ih_p, w_hh_p, b_p, w_lin_p, b_lin_p, num_outputs):
    """Forward pass equivalent to RNN.forward (num_layers=1, unidirectional).

    x:     (B, T, I) float32   batch-first
    state: (1, B, H) float32
    returns (output (B, O), new_state (1, B, H))
    """
    B, T, I = x.shape
    H = state.shape[-1]
    Hp = w_hh_p.shape[0]
    Op = w_lin_p.shape[1]
    O = num_outputs
    f32 = jnp.float32

    x = x.astype(f32)
    state = state.astype(f32)

    # Advisory cost hint so XLA schedules the (tiny) surrounding slices around
    # the custom call instead of serializing on it.
    flops = 2 * B * T * I * Hp + 2 * T * B * Hp * Hp + 2 * B * Hp * Op
    transcendentals = T * B * Hp + B * Op
    bytes_accessed = 4 * (x.size + state.size + w_ih_p.size + w_hh_p.size +
                          b_p.size + w_lin_p.size + b_lin_p.size +
                          B * Op + B * Hp)

    out_p, h_p = pl.pallas_call(
        rnn_kernel,
        out_shape=(jax.ShapeDtypeStruct((B, Op), f32),
                   jax.ShapeDtypeStruct((B, Hp), f32)),
        grid_spec=pltpu.PrefetchScalarGridSpec(
            num_scalar_prefetch=0,
            grid=(1,),  # single invocation; the time loop lives inside the kernel
            in_specs=[
                pl.BlockSpec((B, T, I), lambda i: (0, 0, 0)),   # x (batch-first, unpadded)
                pl.BlockSpec((1, B, H), lambda i: (0, 0, 0)),   # h0 (unpadded)
                pl.BlockSpec((I, Hp), lambda i: (0, 0)),        # W_ih^T
                pl.BlockSpec((Hp, Hp), lambda i: (0, 0)),       # W_hh^T
                pl.BlockSpec((1, Hp), lambda i: (0, 0)),        # b_ih + b_hh
                pl.BlockSpec((Hp, Op), lambda i: (0, 0)),       # W_lin^T
                pl.BlockSpec((1, Op), lambda i: (0, 0)),        # b_lin (-1e30 padded)
            ],
            out_specs=(pl.BlockSpec((B, Op), lambda i: (0, 0)),   # softmax output
                       pl.BlockSpec((B, Hp), lambda i: (0, 0))),  # final hidden state
        ),
        compiler_params=pltpu.CompilerParams(
            dimension_semantics=("arbitrary",)),
        cost_estimate=pl.CostEstimate(flops=flops,
                                      transcendentals=transcendentals,
                                      bytes_accessed=bytes_accessed),
        # TODO(synk): on v7x with B >= 16, add a leading 'parallel' batch-tile
        # grid axis (both TensorCores run independent halves of the recurrence)
        # and chunk T to respect the smaller 64 MiB VMEM.
    )(x, state, w_ih_p, w_hh_p, b_p, w_lin_p, b_lin_p)

    return out_p[:, :O], h_p[None, :, :H]


def _reference(x, state, w_ih, w_hh, b_ih, b_hh, w_lin, b_lin):
    """Pure-JAX reference mirroring PyTorch nn.RNN + Linear + Softmax."""
    B, T, I = x.shape
    h = state[0]
    for t in range(T):
        h = jnp.tanh(x[:, t, :] @ w_ih.T + b_ih + h @ w_hh.T + b_hh)
    logits = h @ w_lin.T + b_lin
    out = jax.nn.softmax(logits, axis=-1)
    return out, h[None]


if __name__ == "__main__":
    # Small shapes consistent with the module's forward signature.
    B, T, I, H, O = 2, 8, 16, 32, 8

    key = jax.random.PRNGKey(0)
    ks = jax.random.split(key, 8)
    bound = 1.0 / (H ** 0.5)

    # Deterministic parameter init (shapes match nn.RNN / nn.Linear).
    w_ih = jax.random.uniform(ks[0], (H, I), jnp.float32, -bound, bound)   # weight_ih_l0
    w_hh = jax.random.uniform(ks[1], (H, H), jnp.float32, -bound, bound)   # weight_hh_l0
    b_ih = jax.random.uniform(ks[2], (H,), jnp.float32, -bound, bound)     # bias_ih_l0
    b_hh = jax.random.uniform(ks[3], (H,), jnp.float32, -bound, bound)     # bias_hh_l0
    w_lin = jax.random.uniform(ks[4], (O, H), jnp.float32, -bound, bound)  # linear.weight
    b_lin = jax.random.uniform(ks[5], (O,), jnp.float32, -bound, bound)    # linear.bias

    x = jax.random.normal(ks[6], (B, T, I), jnp.float32)
    state = jax.random.normal(ks[7], (1, B, H), jnp.float32)

    # Weight padding happens ONCE here (model init), not per forward call.
    padded = pad_rnn_params(w_ih, w_hh, b_ih, b_hh, w_lin, b_lin)

    out, new_state = rnn_forward(x, state, *padded, O)
    jax.block_until_ready((out, new_state))

    ref_out, ref_state = _reference(x, state, w_ih, w_hh, b_ih, b_hh, w_lin, b_lin)
    assert out.shape == (B, O) and new_state.shape == (1, B, H)
    assert jnp.allclose(out, ref_out, atol=1e-5, rtol=1e-5)
    assert jnp.allclose(new_state, ref_state, atol=1e-5, rtol=1e-5)

    print("KERNEL_OK")
</pallas_src>

<mosaic_0001>
module attributes {stable_mosaic.version = 11 : i64} {
  func.func @rnn_kernel(%arg0: i32, %arg1: memref<2x8x16xf32, #tpu.memory_space<vmem>>, %arg2: memref<1x2x32xf32, #tpu.memory_space<vmem>>, %arg3: memref<16x128xf32, #tpu.memory_space<vmem>>, %arg4: memref<128x128xf32, #tpu.memory_space<vmem>>, %arg5: memref<1x128xf32, #tpu.memory_space<vmem>>, %arg6: memref<128x128xf32, #tpu.memory_space<vmem>>, %arg7: memref<1x128xf32, #tpu.memory_space<vmem>>, %arg8: memref<2x128xf32, #tpu.memory_space<vmem>>, %arg9: memref<2x128xf32, #tpu.memory_space<vmem>>) attributes {dimension_semantics = [#tpu.dimension_semantics<arbitrary>], iteration_bounds = array<i64: 1>, scalar_prefetch = 0 : i64, scratch_operands = 0 : i64, tpu.core_type = #tpu.core_type<tc>, window_params = [{pipeline_mode = #tpu.pipeline_mode<synchronous>, transform_indices = @transform_0, window_bounds = array<i64: 2, 8, 16>}, {pipeline_mode = #tpu.pipeline_mode<synchronous>, transform_indices = @transform_1, window_bounds = array<i64: 1, 2, 32>}, {pipeline_mode = #tpu.pipeline_mode<synchronous>, transform_indices = @transform_2, window_bounds = array<i64: 16, 128>}, {pipeline_mode = #tpu.pipeline_mode<synchronous>, transform_indices = @transform_3, window_bounds = array<i64: 128, 128>}, {pipeline_mode = #tpu.pipeline_mode<synchronous>, transform_indices = @transform_4, window_bounds = array<i64: 1, 128>}, {pipeline_mode = #tpu.pipeline_mode<synchronous>, transform_indices = @transform_5, window_bounds = array<i64: 128, 128>}, {pipeline_mode = #tpu.pipeline_mode<synchronous>, transform_indices = @transform_6, window_bounds = array<i64: 1, 128>}, {pipeline_mode = #tpu.pipeline_mode<synchronous>, transform_indices = @transform_7, window_bounds = array<i64: 2, 128>}, {pipeline_mode = #tpu.pipeline_mode<synchronous>, transform_indices = @transform_8, window_bounds = array<i64: 2, 128>}]} {
    %c0 = arith.constant 0 : index
    %c0_0 = arith.constant 0 : index
    %c0_1 = arith.constant 0 : index
    %0 = vector.load %arg1[%c0, %c0_0, %c0_1] : memref<2x8x16xf32, #tpu.memory_space<vmem>>, vector<2x8x16xf32>
    %1 = vector.shape_cast %0 : vector<2x8x16xf32> to vector<16x16xf32>
    %c0_2 = arith.constant 0 : index
    %c0_3 = arith.constant 0 : index
    %2 = vector.load %arg3[%c0_2, %c0_3] : memref<16x128xf32, #tpu.memory_space<vmem>>, vector<16x128xf32>
    %cst = arith.constant dense<0.000000e+00> : vector<16x128xf32>
    %3 = tpu.matmul %1, %2, %cst {dimension_numbers = #tpu.dot_dimension_numbers<[1], [0], [0], [1], [0, 0, 1, 1], [], []>} : vector<16x16xf32>, vector<16x128xf32>, vector<16x128xf32> -> vector<16x128xf32>
    %c0_4 = arith.constant 0 : index
    %c0_5 = arith.constant 0 : index
    %4 = vector.load %arg5[%c0_4, %c0_5] : memref<1x128xf32, #tpu.memory_space<vmem>>, vector<1x128xf32>
    %5 = vector.broadcast %4 : vector<1x128xf32> to vector<16x128xf32>
    %6 = arith.addf %3, %5 : vector<16x128xf32>
    %7 = vector.shape_cast %6 : vector<16x128xf32> to vector<2x8x128xf32>
    %c0_6 = arith.constant 0 : index
    %c0_7 = arith.constant 0 : index
    %8 = vector.load %arg4[%c0_6, %c0_7] : memref<128x128xf32, #tpu.memory_space<vmem>>, vector<128x128xf32>
    %9 = vector.extract_strided_slice %7 {offsets = [0, 0, 0], sizes = [2, 1, 128], strides = [1, 1, 1]} : vector<2x8x128xf32> to vector<2x1x128xf32>
    %10 = vector.shape_cast %9 : vector<2x1x128xf32> to vector<2x128xf32>
    %c0_8 = arith.constant 0 : index
    %c0_9 = arith.constant 0 : index
    %c0_10 = arith.constant 0 : index
    %11 = vector.load %arg2[%c0_8, %c0_9, %c0_10] : memref<1x2x32xf32, #tpu.memory_space<vmem>>, vector<1x2x32xf32>
    %12 = vector.shape_cast %11 : vector<1x2x32xf32> to vector<2x32xf32>
    %13 = vector.extract_strided_slice %8 {offsets = [0, 0], sizes = [32, 128], strides = [1, 1]} : vector<128x128xf32> to vector<32x128xf32>
    %cst_11 = arith.constant dense<0.000000e+00> : vector<2x128xf32>
    %14 = tpu.matmul %12, %13, %cst_11 {dimension_numbers = #tpu.dot_dimension_numbers<[1], [0], [0], [1], [0, 0, 1, 1], [], []>} : vector<2x32xf32>, vector<32x128xf32>, vector<2x128xf32> -> vector<2x128xf32>
    %15 = arith.addf %10, %14 : vector<2x128xf32>
    %16 = math.tanh %15 : vector<2x128xf32>
    %17 = vector.extract_strided_slice %7 {offsets = [0, 1, 0], sizes = [2, 1, 128], strides = [1, 1, 1]} : vector<2x8x128xf32> to vector<2x1x128xf32>
    %18 = vector.shape_cast %17 : vector<2x1x128xf32> to vector<2x128xf32>
    %cst_12 = arith.constant dense<0.000000e+00> : vector<2x128xf32>
    %19 = tpu.matmul %16, %8, %cst_12 {dimension_numbers = #tpu.dot_dimension_numbers<[1], [0], [0], [1], [0, 0, 1, 1], [], []>} : vector<2x128xf32>, vector<128x128xf32>, vector<2x128xf32> -> vector<2x128xf32>
    %20 = arith.addf %18, %19 : vector<2x128xf32>
    %21 = math.tanh %20 : vector<2x128xf32>
    %22 = vector.extract_strided_slice %7 {offsets = [0, 2, 0], sizes = [2, 1, 128], strides = [1, 1, 1]} : vector<2x8x128xf32> to vector<2x1x128xf32>
    %23 = vector.shape_cast %22 : vector<2x1x128xf32> to vector<2x128xf32>
    %cst_13 = arith.constant dense<0.000000e+00> : vector<2x128xf32>
    %24 = tpu.matmul %21, %8, %cst_13 {dimension_numbers = #tpu.dot_dimension_numbers<[1], [0], [0], [1], [0, 0, 1, 1], [], []>} : vector<2x128xf32>, vector<128x128xf32>, vector<2x128xf32> -> vector<2x128xf32>
    %25 = arith.addf %23, %24 : vector<2x128xf32>
    %26 = math.tanh %25 : vector<2x128xf32>
    %27 = vector.extract_strided_slice %7 {offsets = [0, 3, 0], sizes = [2, 1, 128], strides = [1, 1, 1]} : vector<2x8x128xf32> to vector<2x1x128xf32>
    %28 = vector.shape_cast %27 : vector<2x1x128xf32> to vector<2x128xf32>
    %cst_14 = arith.constant dense<0.000000e+00> : vector<2x128xf32>
    %29 = tpu.matmul %26, %8, %cst_14 {dimension_numbers = #tpu.dot_dimension_numbers<[1], [0], [0], [1], [0, 0, 1, 1], [], []>} : vector<2x128xf32>, vector<128x128xf32>, vector<2x128xf32> -> vector<2x128xf32>
    %30 = arith.addf %28, %29 : vector<2x128xf32>
    %31 = math.tanh %30 : vector<2x128xf32>
    %32 = vector.extract_strided_slice %7 {offsets = [0, 4, 0], sizes = [2, 1, 128], strides = [1, 1, 1]} : vector<2x8x128xf32> to vector<2x1x128xf32>
    %33 = vector.shape_cast %32 : vector<2x1x128xf32> to vector<2x128xf32>
    %cst_15 = arith.constant dense<0.000000e+00> : vector<2x128xf32>
    %34 = tpu.matmul %31, %8, %cst_15 {dimension_numbers = #tpu.dot_dimension_numbers<[1], [0], [0], [1], [0, 0, 1, 1], [], []>} : vector<2x128xf32>, vector<128x128xf32>, vector<2x128xf32> -> vector<2x128xf32>
    %35 = arith.addf %33, %34 : vector<2x128xf32>
    %36 = math.tanh %35 : vector<2x128xf32>
    %37 = vector.extract_strided_slice %7 {offsets = [0, 5, 0], sizes = [2, 1, 128], strides = [1, 1, 1]} : vector<2x8x128xf32> to vector<2x1x128xf32>
    %38 = vector.shape_cast %37 : vector<2x1x128xf32> to vector<2x128xf32>
    %cst_16 = arith.constant dense<0.000000e+00> : vector<2x128xf32>
    %39 = tpu.matmul %36, %8, %cst_16 {dimension_numbers = #tpu.dot_dimension_numbers<[1], [0], [0], [1], [0, 0, 1, 1], [], []>} : vector<2x128xf32>, vector<128x128xf32>, vector<2x128xf32> -> vector<2x128xf32>
    %40 = arith.addf %38, %39 : vector<2x128xf32>
    %41 = math.tanh %40 : vector<2x128xf32>
    %42 = vector.extract_strided_slice %7 {offsets = [0, 6, 0], sizes = [2, 1, 128], strides = [1, 1, 1]} : vector<2x8x128xf32> to vector<2x1x128xf32>
    %43 = vector.shape_cast %42 : vector<2x1x128xf32> to vector<2x128xf32>
    %cst_17 = arith.constant dense<0.000000e+00> : vector<2x128xf32>
    %44 = tpu.matmul %41, %8, %cst_17 {dimension_numbers = #tpu.dot_dimension_numbers<[1], [0], [0], [1], [0, 0, 1, 1], [], []>} : vector<2x128xf32>, vector<128x128xf32>, vector<2x128xf32> -> vector<2x128xf32>
    %45 = arith.addf %43, %44 : vector<2x128xf32>
    %46 = math.tanh %45 : vector<2x128xf32>
    %47 = vector.extract_strided_slice %7 {offsets = [0, 7, 0], sizes = [2, 1, 128], strides = [1, 1, 1]} : vector<2x8x128xf32> to vector<2x1x128xf32>
    %48 = vector.shape_cast %47 : vector<2x1x128xf32> to vector<2x128xf32>
    %cst_18 = arith.constant dense<0.000000e+00> : vector<2x128xf32>
    %49 = tpu.matmul %46, %8, %cst_18 {dimension_numbers = #tpu.dot_dimension_numbers<[1], [0], [0], [1], [0, 0, 1, 1], [], []>} : vector<2x128xf32>, vector<128x128xf32>, vector<2x128xf32> -> vector<2x128xf32>
    %50 = arith.addf %48, %49 : vector<2x128xf32>
    %51 = math.tanh %50 : vector<2x128xf32>
    %c0_19 = arith.constant 0 : index
    %c0_20 = arith.constant 0 : index
    %52 = vector.load %arg9[%c0_19, %c0_20] : memref<2x128xf32, #tpu.memory_space<vmem>>, vector<2x128xf32>
    tpu.vector_store %arg9[%c0_19, %c0_20], %51 {strides = array<i32>} : memref<2x128xf32, #tpu.memory_space<vmem>>, vector<2x128xf32>,
    %c0_21 = arith.constant 0 : index
    %c0_22 = arith.constant 0 : index
    %53 = vector.load %arg6[%c0_21, %c0_22] : memref<128x128xf32, #tpu.memory_space<vmem>>, vector<128x128xf32>
    %cst_23 = arith.constant dense<0.000000e+00> : vector<2x128xf32>
    %54 = tpu.matmul %51, %53, %cst_23 {dimension_numbers = #tpu.dot_dimension_numbers<[1], [0], [0], [1], [0, 0, 1, 1], [], []>} : vector<2x128xf32>, vector<128x128xf32>, vector<2x128xf32> -> vector<2x128xf32>
    %c0_24 = arith.constant 0 : index
    %c0_25 = arith.constant 0 : index
    %55 = vector.load %arg7[%c0_24, %c0_25] : memref<1x128xf32, #tpu.memory_space<vmem>>, vector<1x128xf32>
    %56 = vector.broadcast %55 : vector<1x128xf32> to vector<2x128xf32>
    %57 = arith.addf %54, %56 : vector<2x128xf32>
    %cst_26 = arith.constant dense<0xFF800000> : vector<2xf32>
    %58 = vector.multi_reduction <maximumf>, %57, %cst_26 [1] : vector<2x128xf32> to vector<2xf32>
    %59 = vector.shape_cast %58 : vector<2xf32> to vector<2x1xf32>
    %60 = vector.broadcast %59 : vector<2x1xf32> to vector<2x128xf32>
    %61 = arith.subf %57, %60 : vector<2x128xf32>
    %62 = math.exp %61 : vector<2x128xf32>
    %cst_27 = arith.constant dense<0.000000e+00> : vector<2xf32>
    %63 = vector.multi_reduction <add>, %62, %cst_27 [1] : vector<2x128xf32> to vector<2xf32>
    %64 = vector.shape_cast %63 : vector<2xf32> to vector<2x1xf32>
    %65 = tpu.reciprocal %64 {approx = true} : vector<2x1xf32> -> vector<2x1xf32>
    %66 = arith.mulf %64, %65 : vector<2x1xf32>
    %cst_28 = arith.constant 2.000000e+00 : f32
    %67 = vector.broadcast %cst_28 : f32 to vector<2x1xf32>
    %68 = arith.subf %67, %66 : vector<2x1xf32>
    %69 = arith.mulf %65, %68 : vector<2x1xf32>
    %70 = vector.broadcast %69 : vector<2x1xf32> to vector<2x128xf32>
    %71 = arith.mulf %62, %70 : vector<2x128xf32>
    %c0_29 = arith.constant 0 : index
    %c0_30 = arith.constant 0 : index
    %72 = vector.load %arg8[%c0_29, %c0_30] : memref<2x128xf32, #tpu.memory_space<vmem>>, vector<2x128xf32>
    tpu.vector_store %arg8[%c0_29, %c0_30], %71 {strides = array<i32>} : memref<2x128xf32, #tpu.memory_space<vmem>>, vector<2x128xf32>,
    return
  }
  func.func @transform_0(%arg0: i32) -> (i32, i32, i32) {
    %c0_i32 = arith.constant 0 : i32
    %c0_i32_0 = arith.constant 0 : i32
    %c0_i32_1 = arith.constant 0 : i32
    %c0_i32_2 = arith.constant 0 : i32
    return %c0_i32, %c0_i32_0, %c0_i32_1 : i32, i32, i32
  }
  func.func @transform_1(%arg0: i32) -> (i32, i32, i32) {
    %c0_i32 = arith.constant 0 : i32
    %c0_i32_0 = arith.constant 0 : i32
    %c0_i32_1 = arith.constant 0 : i32
    %c0_i32_2 = arith.constant 0 : i32
    return %c0_i32, %c0_i32_0, %c0_i32_1 : i32, i32, i32
  }
  func.func @transform_2(%arg0: i32) -> (i32, i32) {
    %c0_i32 = arith.constant 0 : i32
    %c0_i32_0 = arith.constant 0 : i32
    %c0_i32_1 = arith.constant 0 : i32
    return %c0_i32, %c0_i32_0 : i32, i32
  }
  func.func @transform_3(%arg0: i32) -> (i32, i32) {
    %c0_i32 = arith.constant 0 : i32
    %c0_i32_0 = arith.constant 0 : i32
    %c0_i32_1 = arith.constant 0 : i32
    return %c0_i32, %c0_i32_0 : i32, i32
  }
  func.func @transform_4(%arg0: i32) -> (i32, i32) {
    %c0_i32 = arith.constant 0 : i32
    %c0_i32_0 = arith.constant 0 : i32
    %c0_i32_1 = arith.constant 0 : i32
    return %c0_i32, %c0_i32_0 : i32, i32
  }
  func.func @transform_5(%arg0: i32) -> (i32, i32) {
    %c0_i32 = arith.constant 0 : i32
    %c0_i32_0 = arith.constant 0 : i32
    %c0_i32_1 = arith.constant 0 : i32
    return %c0_i32, %c0_i32_0 : i32, i32
  }
  func.func @transform_6(%arg0: i32) -> (i32, i32) {
    %c0_i32 = arith.constant 0 : i32
    %c0_i32_0 = arith.constant 0 : i32
    %c0_i32_1 = arith.constant 0 : i32
    return %c0_i32, %c0_i32_0 : i32, i32
  }
  func.func @transform_7(%arg0: i32) -> (i32, i32) {
    %c0_i32 = arith.constant 0 : i32
    %c0_i32_0 = arith.constant 0 : i32
    %c0_i32_1 = arith.constant 0 : i32
    return %c0_i32, %c0_i32_0 : i32, i32
  }
  func.func @transform_8(%arg0: i32) -> (i32, i32) {
    %c0_i32 = arith.constant 0 : i32
    %c0_i32_0 = arith.constant 0 : i32
    %c0_i32_1 = arith.constant 0 : i32
    return %c0_i32, %c0_i32_0 : i32, i32
  }
}

</mosaic_0001>

<bundles_post_ra>
// kernel: rnn_forward.1
= control target key start
LH: loop header
LB: loop body
LE: loop exit
PB: predicated region body
PF: predicated region fallthrough
CT: control target
= control target key end

     0   :  { %14 = vsyncpa [#allocation3], 0  ;;  %s2066_s0 = inlined_call_operand.hbm [shape: f32[2,8,16], index: 0, kind: input, shape index: {}]   ;;  %s2067_s1 = inlined_call_operand.hbm [shape: f32[1,2,32], index: 1, kind: input, shape index: {}]   ;;  %s2068_s2 = inlined_call_operand.hbm [shape: f32[16,128], index: 2, kind: input, shape index: {}]   ;;  %s2069_s3 = inlined_call_operand.hbm [shape: f32[128,128], index: 3, kind: input, shape index: {}]   ;;  %s2070_s4 = inlined_call_operand.vmem [shape: f32[1,128], index: 4, kind: input, shape index: {}]   ;;  %s2071_s5 = inlined_call_operand.hbm [shape: f32[128,128], index: 5, kind: input, shape index: {}]   ;;  %s2072_s6 = inlined_call_operand.vmem [shape: f32[1,128], index: 6, kind: input, shape index: {}]   ;;  %s2073_s7 = inlined_call_operand.hbm [shape: f32[2,128], index: 7, kind: output, shape index: {0}]   ;;  %s2074_s8 = inlined_call_operand.vmem [shape: f32[2,128], index: 8, kind: output, shape index: {1}]  }
   0x1   :  { %15 = vsyncpa [#allocation6], 0 }
   0x2   :  { %16 = vsyncpa [#allocation9], 0 }
   0x3   :  { %17 = vsyncpa [#allocation4], 0  ;;  %s1643_s27 = smov [#allocation5]  }
   0x4   :  { %s36_s28 = sshll.u32 %s1643_s27, 4  ;;  %s37_s28 = int_to_ptr.vmem [resolvable:$true] %s36_s28 }
   0x5   :  { %s1523_s29 = scalar_lea.vmem %s37_s28, 32  ;;  %p1528_p1 = scmp.lt.s32.totalorder %s37_s28, %s37_s28 }
   0x6   :  { %p1524_p0 = scmp.ne.s32.totalorder %s37_s28, %s1523_s29  ;;  %p1529_p2 = scmp.lt.s32.totalorder %s1523_s29, %s1523_s29 }
   0x8   :  { %p1530_p3 = por %p1529_p2, %p1528_p1 }
   0xa   :  { %p1531_p4 = pnand %p1530_p3, %p1524_p0 }
   0xc   :  { %1534 = shalt.err (!%p1531_p4)
}
   0xd   :  { %39 = dma.hbm_to_vmem [thread:$0]  %s2067_s1, 32, %s37_s28, [#allocation6]  }
   0xe   :  { %s1644_s10 = smov [#allocation8]   ;;  %s1645_s12 = smov [#allocation2]  }
   0xf   :  { %s57_s11 = sshll.u32 %s1644_s10, 4  ;;  %s23_s13 = sshll.u32 %s1645_s12, 4  ;;  %s58_s11 = int_to_ptr.vmem [resolvable:$true] %s57_s11  ;;  %s24_s13 = int_to_ptr.vmem [resolvable:$true] %s23_s13 }
  0x10   :  { %s1543_s14 = scalar_lea.vmem %s58_s11, 2048  ;;  %p1548_p6 = scmp.lt.s32.totalorder %s58_s11, %s58_s11 }
  0x11   :  { %p1544_p5 = scmp.ne.s32.totalorder %s58_s11, %s1543_s14  ;;  %p1549_p7 = scmp.lt.s32.totalorder %s1543_s14, %s1543_s14 }
  0x13   :  { %p1550_p8 = por %p1549_p7, %p1548_p6 }
  0x15   :  { %p1551_p9 = pnand %p1550_p8, %p1544_p5 }
  0x17   :  { %1554 = shalt.err (!%p1551_p9)
}
  0x18   :  { %s1646_s15 = smov 128   ;;  %s1647_s16 = smov 8  }
  0x19   :  { %63 = dma.hbm_to_vmem [thread:$0]  %s2069_s3, 2048, %s58_s11, [#allocation9], %s1646_s15, %s1646_s15, %s1647_s16  }
  0x1a   :  { %s1563_s1 = scalar_lea.vmem %s24_s13, 256  ;;  %p1568_p11 = scmp.lt.s32.totalorder %s24_s13, %s24_s13 }
  0x1b   :  { %p1564_p10 = scmp.ne.s32.totalorder %s24_s13, %s1563_s1  ;;  %p1569_p12 = scmp.lt.s32.totalorder %s1563_s1, %s1563_s1 }
  0x1d   :  { %p1570_p13 = por %p1569_p12, %p1568_p11 }
  0x1f   :  { %p1571_p0 = pnand %p1570_p13, %p1564_p10 }
  0x21   :  { %1574 = shalt.err (!%p1571_p0)
}
  0x22   :  { %29 = dma.hbm_to_vmem [thread:$0]  %s2066_s0, 256, %s24_s13, [#allocation3], %s1646_s15, %s1646_s15, %s1647_s16  }
  0x23   :  { %s1648_s21 = smov [#allocation7]   ;;  %s1649_s23 = smov [#allocation10]  }
  0x24   :  { %s45_s22 = sshll.u32 %s1648_s21, 4  ;;  %s71_s3 = sshll.u32 %s1649_s23, 4  ;;  %s46_s22 = int_to_ptr.vmem [resolvable:$true] %s45_s22  ;;  %s72_s3 = int_to_ptr.vmem [resolvable:$true] %s71_s3 }
  0x25   :  { %s1583_s24 = scalar_lea.vmem %s46_s22, 256  ;;  %p1588_p2 = scmp.lt.s32.totalorder %s46_s22, %s46_s22 }
  0x26   :  { %p1584_p1 = scmp.ne.s32.totalorder %s46_s22, %s1583_s24  ;;  %p1589_p3 = scmp.lt.s32.totalorder %s1583_s24, %s1583_s24 }
  0x28   :  { %p1590_p4 = por %p1589_p3, %p1588_p2 }
  0x2a   :  { %p1591_p5 = pnand %p1590_p4, %p1584_p1 }
  0x2c   :  { %1594 = shalt.err (!%p1591_p5)
}
  0x2d   :  { %51 = dma.hbm_to_vmem [thread:$0]  %s2068_s2, 256, %s46_s22, [#allocation6], %s1646_s15, %s1646_s15, %s1647_s16  }
  0x2e   :  { %s1603_s0 = scalar_lea.vmem %s72_s3, 2048  ;;  %p1608_p7 = scmp.lt.s32.totalorder %s72_s3, %s72_s3 }
  0x2f   :  { %p1604_p6 = scmp.ne.s32.totalorder %s72_s3, %s1603_s0  ;;  %p1609_p8 = scmp.lt.s32.totalorder %s1603_s0, %s1603_s0 }
  0x31   :  { %p1610_p9 = por %p1609_p8, %p1608_p7 }
  0x33   :  { %p1611_p10 = pnand %p1610_p9, %p1604_p6 }
  0x35   :  { %1614 = shalt.err (!%p1611_p10)
}
  0x36   :  { %77 = dma.hbm_to_vmem [thread:$0]  %s2071_s5, 2048, %s72_s3, [#allocation9], %s1646_s15, %s1646_s15, %s1647_s16  }
  0x37   :  { %1635 = dma.done.wait [#allocation3], 256  }
  0x38   :  { %1636 = vsyncadd [#allocation3], 4294967040 }
  0x39   :  { %1637 = dma.done.wait [#allocation6], 288  }
  0x3a   :  { %1638 = vsyncadd [#allocation6], 4294967008 }
  0x3b   :  { %1639 = dma.done.wait [#allocation9], 4096  }
  0x3c   :  { %1640 = vsyncadd [#allocation9], 4294963200  ;;  %v1650_v0 = vmov 0.0   ;;  %vm1651_vm0 = vmmov 0   ;;  %v98_v1 = vld [vmem:[#allocation7 + $0x8] sm:$0xff]  ;;  %v97_v3 = vld [vmem:[#allocation7] sm:$0xff] }
  0x3d   :  { %1178 = vmatprep.subr.mxu1 %v1650_v0  ;;  %1186 = vmatprep.mubr.msk.f32.mxu1 %vm1651_vm0, %v1650_v0  ;;  %v1728_v2 = vld [vmem:[#allocation8 + $0x18] sm:$0xff]  ;;  %v1731_v4 = vld [vmem:[#allocation8 + $0x10] sm:$0xff]  ;;  %vm106_vm1 = vcmask 130048   ;;  %v96_v6 = vld [vmem:[#allocation2 + $0x8] sm:$0xff]  ;;  %vm205_vm2 = vcmask 261120   ;;  %vm290_vm3 = vcmask 1041409  }
  0x3e   :  { %1171 = vmatprep.subr.mxu0 %v98_v1  ;;  %1179 = vmatpush3.msra.mxu1 %v1728_v2  ;;  %v95_v5 = vld [vmem:[#allocation2] sm:$0xff]  ;;  %v1735_v7 = vld [vmem:[#allocation8 + $0x8] sm:$0xff]  ;;  %v1744_v11 = vld [vmem:[#allocation8 + $0x70] sm:$0xff]  ;;  %vm984_vm4 = vcmask 1041408  }
  0x3f   :  { %1172 = vmatpush3.msra.mxu0 %v98_v1  ;;  %1180 = vmatprep.subr.mxu1 %v1650_v0  ;;  %v1737_v8 = vld [vmem:[#allocation8 + $0x78] sm:$0xff]  ;;  %v1740_v9 = vld [vmem:[#allocation8] sm:$0xff]  ;;  %v204_v10 = vld [vmem:[#allocation5] sm:$0x3] }
  0x40   :  { %1173 = vmatprep.subr.mxu0 %v97_v3  ;;  %1181 = vmatpush3.msra.mxu1 %v1731_v4  ;;  %v1750_v12 = vld [vmem:[#allocation8 + $0x68] sm:$0xff]  ;;  %v1767_v13 = vld [vmem:[#allocation8 + $0x60] sm:$0xff]  ;;  %v1772_v14 = vld [vmem:[#allocation8 + $0x58] sm:$0xff] }
  0x41   :  { %1174 = vmatpush3.msra.mxu0 %v97_v3  ;;  %1175 = vmatprep.mubr.msk.f32.mxu0 %vm106_vm1, %v95_v5  ;;  %v1778_v15 = vld [vmem:[#allocation8 + $0x50] sm:$0xff]  ;;  %v1784_v16 = vld [vmem:[#allocation8 + $0x48] sm:$0xff]  ;;  %v1790_v17 = vld [vmem:[#allocation8 + $0x40] sm:$0xff] }
  0x42   :  { %1182 = vmatprep.subr.mxu1 %v1650_v0  ;;  %1176 = vmatmul.mubr.msk.f32.vlgmr.msra.gmra.mxu0 %vm106_vm1, %v96_v6  ;;  %v1796_v18 = vld [vmem:[#allocation8 + $0x38] sm:$0xff]  ;;  %v1802_v19 = vld [vmem:[#allocation8 + $0x30] sm:$0xff]  ;;  %v1808_v20 = vld [vmem:[#allocation8 + $0x28] sm:$0xff] }
  0x43   :  { %1183 = vmatpush3.msra.mxu1 %v1735_v7  ;;  %1189 = vmatprep.subr.mxu0 %v1650_v0  ;;  %v1814_v21 = vld [vmem:[#allocation8 + $0x20] sm:$0xff]  ;;  %v1021_v23 = vld [vmem:[%s2070_s4] ss:$0 sm:$0xff] }
  0x44   :  { %1184 = vmatprep.subr.mxu1 %v1650_v0  ;;  %1190 = vmatpush3.msra.mxu0 %v1737_v8 }
  0x45   :  { %1185 = vmatpush3.msra.mxu1 %v1740_v9  ;;  %1191 = vmatprep.subr.mxu0 %v1650_v0 }
  0x46   :  { %1187 = vmatmul.mubr.msk.f32.vlgmr.msra.gmra.mxu1 %vm205_vm2, %v204_v10  ;;  %1192 = vmatpush3.msra.mxu0 %v1744_v11 }
  0x47   :  { %1193 = vmatprep.subr.mxu0 %v1650_v0  ;;  %1221 = vmatprep.mubr.msk.f32.mxu0 %vm1651_vm0, %v1650_v0 }
  0x48   :  { %1194 = vmatpush3.msra.mxu0 %v1750_v12  ;;  %1224 = vmatprep.subr.mxu1 %v1650_v0 }
  0x49   :  { %1195 = vmatprep.subr.mxu0 %v1650_v0  ;;  %1225 = vmatpush3.msra.mxu1 %v1737_v8 }
  0x4a   :  { %1226 = vmatprep.subr.mxu1 %v1650_v0  ;;  %1256 = vmatprep.mubr.msk.f32.mxu1 %vm1651_vm0, %v1650_v0 }
  0x4b   :  { %1227 = vmatpush3.msra.mxu1 %v1744_v11  ;;  %1196 = vmatpush3.msra.mxu0 %v1767_v13 }
  0x4c   :  { %1228 = vmatprep.subr.mxu1 %v1650_v0  ;;  %1197 = vmatprep.subr.mxu0 %v1650_v0 }
  0x4d   :  { %1229 = vmatpush3.msra.mxu1 %v1750_v12  ;;  %1198 = vmatpush3.msra.mxu0 %v1772_v14 }
  0x4e   :  { %1230 = vmatprep.subr.mxu1 %v1650_v0  ;;  %1199 = vmatprep.subr.mxu0 %v1650_v0 }
  0x4f   :  { %1231 = vmatpush3.msra.mxu1 %v1767_v13  ;;  %1200 = vmatpush3.msra.mxu0 %v1778_v15 }
  0x50   :  { %1232 = vmatprep.subr.mxu1 %v1650_v0  ;;  %1201 = vmatprep.subr.mxu0 %v1650_v0 }
  0x51   :  { %1233 = vmatpush3.msra.mxu1 %v1772_v14  ;;  %1202 = vmatpush3.msra.mxu0 %v1784_v16 }
  0x52   :  { %1234 = vmatprep.subr.mxu1 %v1650_v0  ;;  %1203 = vmatprep.subr.mxu0 %v1650_v0 }
  0x53   :  { %1235 = vmatpush3.msra.mxu1 %v1778_v15  ;;  %1204 = vmatpush3.msra.mxu0 %v1790_v17 }
  0x54   :  { %1236 = vmatprep.subr.mxu1 %v1650_v0  ;;  %1205 = vmatprep.subr.mxu0 %v1650_v0 }
  0x55   :  { %1237 = vmatpush3.msra.mxu1 %v1784_v16  ;;  %1206 = vmatpush3.msra.mxu0 %v1796_v18 }
  0x56   :  { %1238 = vmatprep.subr.mxu1 %v1650_v0  ;;  %1207 = vmatprep.subr.mxu0 %v1650_v0 }
  0x57   :  { %1239 = vmatpush3.msra.mxu1 %v1790_v17  ;;  %1208 = vmatpush3.msra.mxu0 %v1802_v19 }
  0x58   :  { %1240 = vmatprep.subr.mxu1 %v1650_v0  ;;  %1209 = vmatprep.subr.mxu0 %v1650_v0 }
  0x59   :  { %1241 = vmatpush3.msra.mxu1 %v1796_v18  ;;  %1210 = vmatpush3.msra.mxu0 %v1808_v20 }
  0x5a   :  { %1242 = vmatprep.subr.mxu1 %v1650_v0  ;;  %1211 = vmatprep.subr.mxu0 %v1650_v0 }
  0x5b   :  { %1243 = vmatpush3.msra.mxu1 %v1802_v19  ;;  %1212 = vmatpush3.msra.mxu0 %v1814_v21 }
  0x5c   :  { %1244 = vmatprep.subr.mxu1 %v1650_v0  ;;  %1213 = vmatprep.subr.mxu0 %v1650_v0 }
  0x5d   :  { %1245 = vmatpush3.msra.mxu1 %v1808_v20  ;;  %1214 = vmatpush3.msra.mxu0 %v1728_v2 }
  0x5e   :  { %1246 = vmatprep.subr.mxu1 %v1650_v0  ;;  %1215 = vmatprep.subr.mxu0 %v1650_v0 }
  0x5f   :  { %1247 = vmatpush3.msra.mxu1 %v1814_v21  ;;  %1216 = vmatpush3.msra.mxu0 %v1731_v4 }
  0x60   :  { %1248 = vmatprep.subr.mxu1 %v1650_v0  ;;  %1217 = vmatprep.subr.mxu0 %v1650_v0 }
  0x61   :  { %1249 = vmatpush3.msra.mxu1 %v1728_v2  ;;  %1218 = vmatpush3.msra.mxu0 %v1735_v7 }
  0x62   :  { %1250 = vmatprep.subr.mxu1 %v1650_v0  ;;  %1219 = vmatprep.subr.mxu0 %v1650_v0 }
  0x63   :  { %1251 = vmatpush3.msra.mxu1 %v1731_v4  ;;  %1220 = vmatpush3.msra.mxu0 %v1740_v9 }
  0x64   :  { %1252 = vmatprep.subr.mxu1 %v1650_v0  ;;  %1259 = vmatprep.subr.mxu0 %v1650_v0 }
  0x65   :  { %1253 = vmatpush3.msra.mxu1 %v1735_v7 }
  0x66   :  { %1254 = vmatprep.subr.mxu1 %v1650_v0 }
  0x67   :  { %1255 = vmatpush3.msra.mxu1 %v1740_v9 }
  0x68   :  { %1294 = vmatprep.subr.mxu1 %v1650_v0 }
 0x102   :  { %v1177_v22 = vpop.f32.mrf.mxu0 }
 0x103   :  { %v1840_v25 = vadd.f32 %v1177_v22, %v1021_v23 }
 0x104   :  { %v179_v24 = vpop.f32.mrf.mxu0 }
 0x105   :  { %v1842_v26 = vadd.f32 %v1021_v23, %v179_v24 }
 0x106   :  { %v275_v27 = vpop.f32.mrf.mxu1 }
 0x107   :  { %v280_v28 = vrot.slane %v275_v27, 1  ;;  %v283_v30 = vadd.f32 %v275_v27, %v1842_v26 }
 0x108   :  { %v1188_v29 = vpop.f32.mrf.mxu1 }
 0x109   :  { %v284_v31 = vadd.f32 %v280_v28, %v1840_v25 }
 0x10b   :  { %1479 = vtanh.f32 %v284_v31 }
 0x10c   :  { %1481 = vtanh.f32 %v283_v30 }
 0x118   :  { %v1480_v32 = vpop.eup %1479 }
 0x119   :  { %v289_v33 = vrot.slane %v1480_v32, 7  ;;  %v1482_v34 = vpop.eup %1481 }
 0x11b   :  { %v291_v35 = vsel %vm290_vm3, %v289_v33, %v1482_v34 }
 0x11c   :  { %1222 = vmatmul.mubr.f32.vlgmr.msra.gmra.mxu0 %v291_v35 }
 0x11d   :  { %1260 = vmatpush3.msra.mxu0 %v1737_v8  ;;  %1291 = vmatprep.mubr.msk.f32.mxu0 %vm1651_vm0, %v1650_v0 }
 0x11e   :  { %1261 = vmatprep.subr.mxu0 %v1650_v0 }
 0x11f   :  { %1262 = vmatpush3.msra.mxu0 %v1744_v11 }
 0x120   :  { %1263 = vmatprep.subr.mxu0 %v1650_v0 }
 0x121   :  { %1264 = vmatpush3.msra.mxu0 %v1750_v12 }
 0x122   :  { %1265 = vmatprep.subr.mxu0 %v1650_v0 }
 0x123   :  { %1266 = vmatpush3.msra.mxu0 %v1767_v13 }
 0x124   :  { %1267 = vmatprep.subr.mxu0 %v1650_v0 }
 0x125   :  { %1268 = vmatpush3.msra.mxu0 %v1772_v14 }
 0x126   :  { %1269 = vmatprep.subr.mxu0 %v1650_v0 }
 0x127   :  { %1270 = vmatpush3.msra.mxu0 %v1778_v15 }
 0x128   :  { %1271 = vmatprep.subr.mxu0 %v1650_v0 }
 0x129   :  { %1272 = vmatpush3.msra.mxu0 %v1784_v16 }
 0x12a   :  { %1273 = vmatprep.subr.mxu0 %v1650_v0 }
 0x12b   :  { %1274 = vmatpush3.msra.mxu0 %v1790_v17 }
 0x12c   :  { %1275 = vmatprep.subr.mxu0 %v1650_v0 }
 0x12d   :  { %1276 = vmatpush3.msra.mxu0 %v1796_v18 }
 0x12e   :  { %1277 = vmatprep.subr.mxu0 %v1650_v0 }
 0x12f   :  { %1278 = vmatpush3.msra.mxu0 %v1802_v19 }
 0x130   :  { %1279 = vmatprep.subr.mxu0 %v1650_v0 }
 0x131   :  { %1280 = vmatpush3.msra.mxu0 %v1808_v20 }
 0x132   :  { %1281 = vmatprep.subr.mxu0 %v1650_v0 }
 0x133   :  { %1282 = vmatpush3.msra.mxu0 %v1814_v21 }
 0x134   :  { %1283 = vmatprep.subr.mxu0 %v1650_v0 }
 0x135   :  { %1284 = vmatpush3.msra.mxu0 %v1728_v2 }
 0x136   :  { %1285 = vmatprep.subr.mxu0 %v1650_v0 }
 0x137   :  { %1286 = vmatpush3.msra.mxu0 %v1731_v4 }
 0x138   :  { %1287 = vmatprep.subr.mxu0 %v1650_v0 }
 0x139   :  { %1288 = vmatpush3.msra.mxu0 %v1735_v7 }
 0x13a   :  { %1289 = vmatprep.subr.mxu0 %v1650_v0 }
 0x13b   :  { %1290 = vmatpush3.msra.mxu0 %v1740_v9 }
 0x13c   :  { %1329 = vmatprep.subr.mxu0 %v1650_v0 }
 0x1dc   :  { %v359_v36 = vpop.f32.mrf.mxu0 }
 0x1dd   :  { %v364_v37 = vrot.slane %v359_v36, 7  ;;  %v368_v40 = vadd.f32 %v359_v36, %v1840_v25 }
 0x1de   :  { %v1223_v38 = vpop.f32.mrf.mxu0 }
 0x1df   :  { %v367_v39 = vadd.f32 %v364_v37, %v1842_v26 }
 0x1e1   :  { %1483 = vtanh.f32 %v367_v39 }
 0x1e2   :  { %1485 = vtanh.f32 %v368_v40 }
 0x1ee   :  { %v1484_v41 = vpop.eup %1483 }
 0x1ef   :  { %v373_v42 = vrot.slane %v1484_v41, 1  ;;  %v1486_v43 = vpop.eup %1485 }
 0x1f1   :  { %v374_v44 = vsel %vm290_vm3, %v1486_v43, %v373_v42 }
 0x1f2   :  { %1257 = vmatmul.mubr.f32.vlgmr.msra.gmra.mxu1 %v374_v44  ;;  %v897_v44 = vld [vmem:[#allocation10 + $0x50] sm:$0xff] }
 0x1f3   :  { %1295 = vmatpush3.msra.mxu1 %v1737_v8  ;;  %1326 = vmatprep.mubr.msk.f32.mxu1 %vm1651_vm0, %v1650_v0 }
 0x1f4   :  { %1296 = vmatprep.subr.mxu1 %v1650_v0 }
 0x1f5   :  { %1297 = vmatpush3.msra.mxu1 %v1744_v11 }
 0x1f6   :  { %1298 = vmatprep.subr.mxu1 %v1650_v0 }
 0x1f7   :  { %1299 = vmatpush3.msra.mxu1 %v1750_v12 }
 0x1f8   :  { %1300 = vmatprep.subr.mxu1 %v1650_v0 }
 0x1f9   :  { %1301 = vmatpush3.msra.mxu1 %v1767_v13 }
 0x1fa   :  { %1302 = vmatprep.subr.mxu1 %v1650_v0 }
 0x1fb   :  { %1303 = vmatpush3.msra.mxu1 %v1772_v14 }
 0x1fc   :  { %1304 = vmatprep.subr.mxu1 %v1650_v0 }
 0x1fd   :  { %1305 = vmatpush3.msra.mxu1 %v1778_v15 }
 0x1fe   :  { %1306 = vmatprep.subr.mxu1 %v1650_v0 }
 0x1ff   :  { %1307 = vmatpush3.msra.mxu1 %v1784_v16 }
 0x200   :  { %1308 = vmatprep.subr.mxu1 %v1650_v0 }
 0x201   :  { %1309 = vmatpush3.msra.mxu1 %v1790_v17 }
 0x202   :  { %1310 = vmatprep.subr.mxu1 %v1650_v0 }
 0x203   :  { %1311 = vmatpush3.msra.mxu1 %v1796_v18 }
 0x204   :  { %1312 = vmatprep.subr.mxu1 %v1650_v0 }
 0x205   :  { %1313 = vmatpush3.msra.mxu1 %v1802_v19 }
 0x206   :  { %1314 = vmatprep.subr.mxu1 %v1650_v0 }
 0x207   :  { %1315 = vmatpush3.msra.mxu1 %v1808_v20 }
 0x208   :  { %1316 = vmatprep.subr.mxu1 %v1650_v0 }
 0x209   :  { %1317 = vmatpush3.msra.mxu1 %v1814_v21 }
 0x20a   :  { %1318 = vmatprep.subr.mxu1 %v1650_v0 }
 0x20b   :  { %1319 = vmatpush3.msra.mxu1 %v1728_v2 }
 0x20c   :  { %1320 = vmatprep.subr.mxu1 %v1650_v0 }
 0x20d   :  { %1321 = vmatpush3.msra.mxu1 %v1731_v4 }
 0x20e   :  { %1322 = vmatprep.subr.mxu1 %v1650_v0 }
 0x20f   :  { %1323 = vmatpush3.msra.mxu1 %v1735_v7 }
 0x210   :  { %1324 = vmatprep.subr.mxu1 %v1650_v0 }
 0x211   :  { %1325 = vmatpush3.msra.mxu1 %v1740_v9 }
 0x212   :  { %1364 = vmatprep.subr.mxu1 %v1650_v0 }
 0x2b2   :  { %v442_v45 = vpop.f32.mrf.mxu1 }
 0x2b3   :  { %v447_v46 = vrot.slane %v442_v45, 6  ;;  %v448_v47 = vrot.slane %v442_v45, 7  ;;  %v896_v45 = vld [vmem:[#allocation10 + $0x48] sm:$0xff] }
 0x2b4   :  { %v1258_v48 = vpop.f32.mrf.mxu1 }
 0x2b5   :  { %v451_v49 = vadd.f32 %v447_v46, %v1842_v26  ;;  %v452_v50 = vadd.f32 %v448_v47, %v1840_v25  ;;  %v895_v46 = vld [vmem:[#allocation10 + $0x40] sm:$0xff]  ;;  %v894_v47 = vld [vmem:[#allocation10 + $0x38] sm:$0xff]  ;;  %v893_v48 = vld [vmem:[#allocation10 + $0x30] sm:$0xff] }
 0x2b7   :  { %1487 = vtanh.f32 %v451_v49  ;;  %v892_v49 = vld [vmem:[#allocation10 + $0x28] sm:$0xff] }
 0x2b8   :  { %1489 = vtanh.f32 %v452_v50  ;;  %v891_v50 = vld [vmem:[#allocation10 + $0x20] sm:$0xff] }
 0x2c4   :  { %v1488_v51 = vpop.eup %1487 }
 0x2c5   :  { %v1490_v52 = vpop.eup %1489  ;;  %v457_v53 = vrot.slane %v1488_v51, 2  ;;  %v890_v51 = vld [vmem:[#allocation10 + $0x18] sm:$0xff] }
 0x2c6   :  { %v458_v54 = vrot.slane %v1490_v52, 1  ;;  %v889_v52 = vld [vmem:[#allocation10 + $0x10] sm:$0xff] }
 0x2c8   :  { %v459_v55 = vsel %vm290_vm3, %v458_v54, %v457_v53  ;;  %v888_v53 = vld [vmem:[#allocation10 + $0x8] sm:$0xff]  ;;  %v887_v54 = vld [vmem:[#allocation10] sm:$0xff] }
 0x2c9   :  { %1292 = vmatmul.mubr.f32.vlgmr.msra.gmra.mxu0 %v459_v55 }
 0x2ca   :  { %1330 = vmatpush3.msra.mxu0 %v1737_v8  ;;  %1361 = vmatprep.mubr.msk.f32.mxu0 %vm1651_vm0, %v1650_v0 }
 0x2cb   :  { %1331 = vmatprep.subr.mxu0 %v1650_v0 }
 0x2cc   :  { %1332 = vmatpush3.msra.mxu0 %v1744_v11 }
 0x2cd   :  { %1333 = vmatprep.subr.mxu0 %v1650_v0 }
 0x2ce   :  { %1334 = vmatpush3.msra.mxu0 %v1750_v12 }
 0x2cf   :  { %1335 = vmatprep.subr.mxu0 %v1650_v0 }
 0x2d0   :  { %1336 = vmatpush3.msra.mxu0 %v1767_v13 }
 0x2d1   :  { %1337 = vmatprep.subr.mxu0 %v1650_v0 }
 0x2d2   :  { %1338 = vmatpush3.msra.mxu0 %v1772_v14 }
 0x2d3   :  { %1339 = vmatprep.subr.mxu0 %v1650_v0 }
 0x2d4   :  { %1340 = vmatpush3.msra.mxu0 %v1778_v15 }
 0x2d5   :  { %1341 = vmatprep.subr.mxu0 %v1650_v0 }
 0x2d6   :  { %1342 = vmatpush3.msra.mxu0 %v1784_v16 }
 0x2d7   :  { %1343 = vmatprep.subr.mxu0 %v1650_v0 }
 0x2d8   :  { %1344 = vmatpush3.msra.mxu0 %v1790_v17 }
 0x2d9   :  { %1345 = vmatprep.subr.mxu0 %v1650_v0 }
 0x2da   :  { %1346 = vmatpush3.msra.mxu0 %v1796_v18 }
 0x2db   :  { %1347 = vmatprep.subr.mxu0 %v1650_v0 }
 0x2dc   :  { %1348 = vmatpush3.msra.mxu0 %v1802_v19 }
 0x2dd   :  { %1349 = vmatprep.subr.mxu0 %v1650_v0 }
 0x2de   :  { %1350 = vmatpush3.msra.mxu0 %v1808_v20 }
 0x2df   :  { %1351 = vmatprep.subr.mxu0 %v1650_v0 }
 0x2e0   :  { %1352 = vmatpush3.msra.mxu0 %v1814_v21 }
 0x2e1   :  { %1353 = vmatprep.subr.mxu0 %v1650_v0 }
 0x2e2   :  { %1354 = vmatpush3.msra.mxu0 %v1728_v2 }
 0x2e3   :  { %1355 = vmatprep.subr.mxu0 %v1650_v0 }
 0x2e4   :  { %1356 = vmatpush3.msra.mxu0 %v1731_v4 }
 0x2e5   :  { %1357 = vmatprep.subr.mxu0 %v1650_v0 }
 0x2e6   :  { %1358 = vmatpush3.msra.mxu0 %v1735_v7 }
 0x2e7   :  { %1359 = vmatprep.subr.mxu0 %v1650_v0 }
 0x2e8   :  { %1360 = vmatpush3.msra.mxu0 %v1740_v9 }
 0x2e9   :  { %1399 = vmatprep.subr.mxu0 %v1650_v0 }
 0x389   :  { %v527_v56 = vpop.f32.mrf.mxu0 }
 0x38a   :  { %v532_v57 = vrot.slane %v527_v56, 5  ;;  %v533_v58 = vrot.slane %v527_v56, 6 }
 0x38b   :  { %v1293_v59 = vpop.f32.mrf.mxu0 }
 0x38c   :  { %v536_v60 = vadd.f32 %v532_v57, %v1842_v26  ;;  %v537_v61 = vadd.f32 %v533_v58, %v1840_v25 }
 0x38e   :  { %1491 = vtanh.f32 %v536_v60 }
 0x38f   :  { %1493 = vtanh.f32 %v537_v61 }
 0x39b   :  { %v1492_v62 = vpop.eup %1491 }
 0x39c   :  { %v1494_v63 = vpop.eup %1493  ;;  %v542_v1 = vrot.slane %v1492_v62, 3 }
 0x39d   :  { %v543_v3 = vrot.slane %v1494_v63, 2 }
 0x39f   :  { %v544_v5 = vsel %vm290_vm3, %v543_v3, %v542_v1 }
 0x3a0   :  { %1327 = vmatmul.mubr.f32.vlgmr.msra.gmra.mxu1 %v544_v5 }
 0x3a1   :  { %1365 = vmatpush3.msra.mxu1 %v1737_v8  ;;  %1396 = vmatprep.mubr.msk.f32.mxu1 %vm1651_vm0, %v1650_v0 }
 0x3a2   :  { %1366 = vmatprep.subr.mxu1 %v1650_v0 }
 0x3a3   :  { %1367 = vmatpush3.msra.mxu1 %v1744_v11 }
 0x3a4   :  { %1368 = vmatprep.subr.mxu1 %v1650_v0 }
 0x3a5   :  { %1369 = vmatpush3.msra.mxu1 %v1750_v12 }
 0x3a6   :  { %1370 = vmatprep.subr.mxu1 %v1650_v0 }
 0x3a7   :  { %1371 = vmatpush3.msra.mxu1 %v1767_v13 }
 0x3a8   :  { %1372 = vmatprep.subr.mxu1 %v1650_v0 }
 0x3a9   :  { %1373 = vmatpush3.msra.mxu1 %v1772_v14 }
 0x3aa   :  { %1374 = vmatprep.subr.mxu1 %v1650_v0 }
 0x3ab   :  { %1375 = vmatpush3.msra.mxu1 %v1778_v15 }
 0x3ac   :  { %1376 = vmatprep.subr.mxu1 %v1650_v0 }
 0x3ad   :  { %1377 = vmatpush3.msra.mxu1 %v1784_v16 }
 0x3ae   :  { %1378 = vmatprep.subr.mxu1 %v1650_v0 }
 0x3af   :  { %1379 = vmatpush3.msra.mxu1 %v1790_v17 }
 0x3b0   :  { %1380 = vmatprep.subr.mxu1 %v1650_v0 }
 0x3b1   :  { %1381 = vmatpush3.msra.mxu1 %v1796_v18 }
 0x3b2   :  { %1382 = vmatprep.subr.mxu1 %v1650_v0 }
 0x3b3   :  { %1383 = vmatpush3.msra.mxu1 %v1802_v19 }
 0x3b4   :  { %1384 = vmatprep.subr.mxu1 %v1650_v0 }
 0x3b5   :  { %1385 = vmatpush3.msra.mxu1 %v1808_v20 }
 0x3b6   :  { %1386 = vmatprep.subr.mxu1 %v1650_v0 }
 0x3b7   :  { %1387 = vmatpush3.msra.mxu1 %v1814_v21 }
 0x3b8   :  { %1388 = vmatprep.subr.mxu1 %v1650_v0 }
 0x3b9   :  { %1389 = vmatpush3.msra.mxu1 %v1728_v2 }
 0x3ba   :  { %1390 = vmatprep.subr.mxu1 %v1650_v0 }
 0x3bb   :  { %1391 = vmatpush3.msra.mxu1 %v1731_v4 }
 0x3bc   :  { %1392 = vmatprep.subr.mxu1 %v1650_v0 }
 0x3bd   :  { %1393 = vmatpush3.msra.mxu1 %v1735_v7 }
 0x3be   :  { %1394 = vmatprep.subr.mxu1 %v1650_v0 }
 0x3bf   :  { %1395 = vmatpush3.msra.mxu1 %v1740_v9 }
 0x3c0   :  { %1434 = vmatprep.subr.mxu1 %v1650_v0 }
 0x460   :  { %v612_v6 = vpop.f32.mrf.mxu1 }
 0x461   :  { %v617_v10 = vrot.slane %v612_v6, 4  ;;  %v618_v22 = vrot.slane %v612_v6, 5 }
 0x462   :  { %v1328_v23 = vpop.f32.mrf.mxu1 }
 0x463   :  { %v621_v24 = vadd.f32 %v617_v10, %v1842_v26  ;;  %v622_v27 = vadd.f32 %v618_v22, %v1840_v25 }
 0x465   :  { %1495 = vtanh.f32 %v621_v24 }
 0x466   :  { %1497 = vtanh.f32 %v622_v27 }
 0x472   :  { %v1496_v28 = vpop.eup %1495 }
 0x473   :  { %v1498_v29 = vpop.eup %1497  ;;  %v627_v30 = vrot.slane %v1496_v28, 4 }
 0x474   :  { %v628_v31 = vrot.slane %v1498_v29, 3 }
 0x476   :  { %v629_v32 = vsel %vm290_vm3, %v628_v31, %v627_v30 }
 0x477   :  { %1362 = vmatmul.mubr.f32.vlgmr.msra.gmra.mxu0 %v629_v32 }
 0x478   :  { %1400 = vmatpush3.msra.mxu0 %v1737_v8  ;;  %1431 = vmatprep.mubr.msk.f32.mxu0 %vm1651_vm0, %v1650_v0 }
 0x479   :  { %1401 = vmatprep.subr.mxu0 %v1650_v0 }
 0x47a   :  { %1402 = vmatpush3.msra.mxu0 %v1744_v11 }
 0x47b   :  { %1403 = vmatprep.subr.mxu0 %v1650_v0 }
 0x47c   :  { %1404 = vmatpush3.msra.mxu0 %v1750_v12 }
 0x47d   :  { %1405 = vmatprep.subr.mxu0 %v1650_v0 }
 0x47e   :  { %1406 = vmatpush3.msra.mxu0 %v1767_v13 }
 0x47f   :  { %1407 = vmatprep.subr.mxu0 %v1650_v0 }
 0x480   :  { %1408 = vmatpush3.msra.mxu0 %v1772_v14 }
 0x481   :  { %1409 = vmatprep.subr.mxu0 %v1650_v0 }
 0x482   :  { %1410 = vmatpush3.msra.mxu0 %v1778_v15 }
 0x483   :  { %1411 = vmatprep.subr.mxu0 %v1650_v0 }
 0x484   :  { %1412 = vmatpush3.msra.mxu0 %v1784_v16 }
 0x485   :  { %1413 = vmatprep.subr.mxu0 %v1650_v0 }
 0x486   :  { %1414 = vmatpush3.msra.mxu0 %v1790_v17 }
 0x487   :  { %1415 = vmatprep.subr.mxu0 %v1650_v0 }
 0x488   :  { %1416 = vmatpush3.msra.mxu0 %v1796_v18  ;;  %v901_v18 = vld [vmem:[#allocation10 + $0x70] sm:$0xff] }
 0x489   :  { %1417 = vmatprep.subr.mxu0 %v1650_v0 }
 0x48a   :  { %1418 = vmatpush3.msra.mxu0 %v1802_v19  ;;  %v900_v19 = vld [vmem:[#allocation10 + $0x68] sm:$0xff] }
 0x48b   :  { %1419 = vmatprep.subr.mxu0 %v1650_v0 }
 0x48c   :  { %1420 = vmatpush3.msra.mxu0 %v1808_v20  ;;  %v899_v20 = vld [vmem:[#allocation10 + $0x60] sm:$0xff] }
 0x48d   :  { %1421 = vmatprep.subr.mxu0 %v1650_v0 }
 0x48e   :  { %1422 = vmatpush3.msra.mxu0 %v1814_v21  ;;  %v898_v21 = vld [vmem:[#allocation10 + $0x58] sm:$0xff] }
 0x48f   :  { %1423 = vmatprep.subr.mxu0 %v1650_v0 }
 0x490   :  { %1424 = vmatpush3.msra.mxu0 %v1728_v2 }
 0x491   :  { %1425 = vmatprep.subr.mxu0 %v1650_v0 }
 0x492   :  { %1426 = vmatpush3.msra.mxu0 %v1731_v4 }
 0x493   :  { %1427 = vmatprep.subr.mxu0 %v1650_v0 }
 0x494   :  { %1428 = vmatpush3.msra.mxu0 %v1735_v7 }
 0x495   :  { %1429 = vmatprep.subr.mxu0 %v1650_v0 }
 0x496   :  { %1430 = vmatpush3.msra.mxu0 %v1740_v9  ;;  %v902_v9 = vld [vmem:[#allocation10 + $0x78] sm:$0xff] }
 0x537   :  { %v697_v8 = vpop.f32.mrf.mxu0 }
 0x538   :  { %v702_v11 = vrot.slane %v697_v8, 3  ;;  %v703_v12 = vrot.slane %v697_v8, 4 }
 0x539   :  { %v1363_v13 = vpop.f32.mrf.mxu0 }
 0x53a   :  { %v706_v14 = vadd.f32 %v702_v11, %v1842_v26  ;;  %v707_v2 = vadd.f32 %v703_v12, %v1840_v25 }
 0x53c   :  { %1499 = vtanh.f32 %v706_v14 }
 0x53d   :  { %1501 = vtanh.f32 %v707_v2 }
 0x549   :  { %v1500_v15 = vpop.eup %1499 }
 0x54a   :  { %v1502_v4 = vpop.eup %1501  ;;  %v712_v16 = vrot.slane %v1500_v15, 5 }
 0x54b   :  { %v713_v17 = vrot.slane %v1502_v4, 4 }
 0x54d   :  { %v714_v7 = vsel %vm290_vm3, %v713_v17, %v712_v16 }
 0x54e   :  { %1397 = vmatmul.mubr.f32.vlgmr.msra.gmra.mxu1 %v714_v7 }
 0x54f   :  { %1466 = vmatprep.mubr.msk.f32.mxu1 %vm1651_vm0, %v1650_v0  ;;  %1435 = vmatpush3.msra.mxu1 %v902_v9 }
 0x550   :  { %1436 = vmatprep.subr.mxu1 %v1650_v0 }
 0x551   :  { %1437 = vmatpush3.msra.mxu1 %v901_v18 }
 0x552   :  { %1438 = vmatprep.subr.mxu1 %v1650_v0 }
 0x553   :  { %1439 = vmatpush3.msra.mxu1 %v900_v19 }
 0x554   :  { %1440 = vmatprep.subr.mxu1 %v1650_v0 }
 0x555   :  { %1441 = vmatpush3.msra.mxu1 %v899_v20 }
 0x556   :  { %1442 = vmatprep.subr.mxu1 %v1650_v0 }
 0x557   :  { %1443 = vmatpush3.msra.mxu1 %v898_v21 }
 0x558   :  { %1444 = vmatprep.subr.mxu1 %v1650_v0 }
 0x559   :  { %1445 = vmatpush3.msra.mxu1 %v897_v44 }
 0x55a   :  { %1446 = vmatprep.subr.mxu1 %v1650_v0 }
 0x55b   :  { %1447 = vmatpush3.msra.mxu1 %v896_v45 }
 0x55c   :  { %1448 = vmatprep.subr.mxu1 %v1650_v0 }
 0x55d   :  { %1449 = vmatpush3.msra.mxu1 %v895_v46 }
 0x55e   :  { %1450 = vmatprep.subr.mxu1 %v1650_v0 }
 0x55f   :  { %1451 = vmatpush3.msra.mxu1 %v894_v47 }
 0x560   :  { %1452 = vmatprep.subr.mxu1 %v1650_v0 }
 0x561   :  { %1453 = vmatpush3.msra.mxu1 %v893_v48 }
 0x562   :  { %1454 = vmatprep.subr.mxu1 %v1650_v0 }
 0x563   :  { %1455 = vmatpush3.msra.mxu1 %v892_v49 }
 0x564   :  { %1456 = vmatprep.subr.mxu1 %v1650_v0 }
 0x565   :  { %1457 = vmatpush3.msra.mxu1 %v891_v50 }
 0x566   :  { %1458 = vmatprep.subr.mxu1 %v1650_v0 }
 0x567   :  { %1459 = vmatpush3.msra.mxu1 %v890_v51 }
 0x568   :  { %1460 = vmatprep.subr.mxu1 %v1650_v0 }
 0x569   :  { %1461 = vmatpush3.msra.mxu1 %v889_v52 }
 0x56a   :  { %1462 = vmatprep.subr.mxu1 %v1650_v0 }
 0x56b   :  { %1463 = vmatpush3.msra.mxu1 %v888_v53 }
 0x56c   :  { %1464 = vmatprep.subr.mxu1 %v1650_v0 }
 0x56d   :  { %1465 = vmatpush3.msra.mxu1 %v887_v54 }
 0x60e   :  { %v782_v33 = vpop.f32.mrf.mxu1 }
 0x60f   :  { %v787_v34 = vrot.slane %v782_v33, 2  ;;  %v788_v35 = vrot.slane %v782_v33, 3 }
 0x610   :  { %v1398_v36 = vpop.f32.mrf.mxu1 }
 0x611   :  { %v791_v37 = vadd.f32 %v787_v34, %v1842_v26  ;;  %v792_v38 = vadd.f32 %v788_v35, %v1840_v25 }
 0x613   :  { %1503 = vtanh.f32 %v791_v37 }
 0x614   :  { %1505 = vtanh.f32 %v792_v38 }
 0x620   :  { %v1504_v39 = vpop.eup %1503 }
 0x621   :  { %v1506_v40 = vpop.eup %1505  ;;  %v797_v41 = vrot.slane %v1504_v39, 6 }
 0x622   :  { %v798_v42 = vrot.slane %v1506_v40, 5 }
 0x624   :  { %v799_v43 = vsel %vm290_vm3, %v798_v42, %v797_v41 }
 0x625   :  { %1432 = vmatmul.mubr.f32.vlgmr.msra.gmra.mxu0 %v799_v43 }
 0x6e5   :  { %v867_v55 = vpop.f32.mrf.mxu0 }
 0x6e6   :  { %v872_v56 = vrot.slane %v867_v55, 1  ;;  %v873_v57 = vrot.slane %v867_v55, 2 }
 0x6e7   :  { %v1433_v58 = vpop.f32.mrf.mxu0 }
 0x6e8   :  { %v876_v59 = vadd.f32 %v872_v56, %v1842_v26  ;;  %v877_v60 = vadd.f32 %v873_v57, %v1840_v25  ;;  %v1025_v25 = vld [vmem:[%s2072_s6] ss:$0 sm:$0xff] }
 0x6ea   :  { %1507 = vtanh.f32 %v876_v59 }
 0x6eb   :  { %1509 = vtanh.f32 %v877_v60 }
 0x6f7   :  { %v1508_v61 = vpop.eup %1507 }
 0x6f8   :  { %v1510_v62 = vpop.eup %1509  ;;  %885 = vst [vmem:[%s2074_s8 - $0x7] sm:$0x80] %v1508_v61  ;;  %v910_v63 = vrot.slane %v1508_v61, 7 }
 0x6f9   :  { %v882_v0 = vrot.slane %v1510_v62, 7  ;;  %v911_v1 = vrot.slane %v1510_v62, 6 }
 0x6fb   :  { %886 = vst [vmem:[%s2074_s8 + $0x1] sm:$0x1] %v882_v0  ;;  %v912_v3 = vsel %vm290_vm3, %v911_v1, %v910_v63  ;;  %s1652_s8 = smov [#allocation11]  }
 0x6fc   :  { %1467 = vmatmul.mubr.f32.vlgmr.msra.gmra.mxu1 %v912_v3  ;;  %s1006_s6 = sshll.u32 %s1652_s8, 4  ;;  %s1007_s6 = int_to_ptr.vmem [resolvable:$true] %s1006_s6 }
 0x6fd   :  { %s1615_s12 = scalar_lea.vmem %s1007_s6, 32  ;;  %p1620_p12 = scmp.lt.s32.totalorder %s1007_s6, %s1007_s6 }
 0x6fe   :  { %p1616_p11 = scmp.ne.s32.totalorder %s1007_s6, %s1615_s12  ;;  %p1621_p13 = scmp.lt.s32.totalorder %s1615_s12, %s1615_s12 }
 0x700   :  { %p1622_p0 = por %p1621_p13, %p1620_p12 }
 0x702   :  { %p1623_p1 = pnand %p1622_p0, %p1616_p11 }
 0x7bc   :  { %v980_v26 = vpop.f32.mrf.mxu1 }
 0x7bd   :  { %v981_v5 = vadd.f32 %v1025_v25, %v980_v26 }
 0x7be   :  { %v1468_v6 = vpop.f32.mrf.mxu1 }
 0x7bf   :  { %v985_v10 = vsel %vm984_vm4, %v981_v5, -inf }
 0x7c0   :  { %986 = vmax.xlane.f32.xlu0 %v985_v10 }
 0x849   :  { %v987_v22 = vpop.xlane.xlu0 %986 }
 0x84a   :  { %v988_v23 = vsub.f32 %v981_v5, %v987_v22 }
 0x84c   :  { %v989_v24 = vmul.f32 1.442695, %v988_v23 }
 0x84e   :  { %1511 = vpow2.f32 %v989_v24 }
 0x85b   :  { %v1512_v27 = vpop.eup %1511 }
 0x85c   :  { %v991_v28 = vsel %vm984_vm4, %v1512_v27, 0.0 }
 0x85d   :  { %992 = vadd.xlane.f32.xlu0 %v991_v28 }
 0x8e6   :  { %v993_v29 = vpop.xlane.xlu0 %992 }
 0x8e7   :  { %1513 = vrcp.f32 %v993_v29 }
 0x8f4   :  { %v1514_v30 = vpop.eup %1513 }
 0x8f5   :  { %v995_v31 = vmul.f32 %v1514_v30, %v993_v29 }
 0x8f7   :  { %v996_v32 = vsub.f32 2.0, %v995_v31 }
 0x8f9   :  { %v997_v8 = vmul.f32 %v1514_v30, %v996_v32 }
 0x8fb   :  { %v998_v11 = vmul.f32 %v1512_v27, %v997_v8 }
 0x8fd   :  { %999 = vst [vmem:[#allocation11] sm:$0x3] %v998_v11 }
 0x8fe   :  { %1626 = shalt.err (!%p1623_p1)
}
 0x8ff   :  { %1009 = dma.vmem_to_hbm [thread:$0]  %s1007_s6, 32, %s2073_s7, [#allocation4]  }
 0x900   :  { %1641 = dma.done.wait [#allocation4], 32  }
 0x901   :  { %1642 = vsyncadd [#allocation4], 4294967264 }
 0x902   :  { %1017 = vsyncpa [#allocation3], 1 }
 0x903   :  { %1018 = vsyncpa [#allocation6], 1 }
 0x904   :  { %1019 = vsyncpa [#allocation9], 1 }
 0x905   :  { %1020 = vsyncpa [#allocation4], 1 }

</bundles_post_ra>
